<compile_context>
chip_gen: v6e
topology: v6e:2x2x1
jax: 0.10.0
libtpu: 0.0.40
codegen_flags: <defaults>
</compile_context>

<pallas_src>
import jax
import jax.numpy as jnp
from jax import lax
from jax.experimental import pallas as pl
from jax.experimental.pallas import tpu as pltpu


def _round_up(v, m):
    return (v + m - 1) // m * m


def value_mlp_kernel(x_ref, w1_ref, b1_ref, w2_ref, b2_ref, w3_ref, b3_ref, o_ref):
    # x_ref: (TILE_B, obs) in the array's native layout (no wrapper x.T and no
    # extra HBM pass).  The contraction over `obs` uses the last dim of both
    # operands, so Mosaic handles the tiny transposed-RHS on-chip and the batch
    # lands in the 128-lane axis of every result.
    dtype = x_ref.dtype
    x = x_ref[...]

    # Layer 1: (h, obs) x (TILE_B, obs) -> (h, TILE_B); MXU accumulates in f32.
    z1 = lax.dot_general(
        w1_ref[...], x,
        dimension_numbers=(((1,), (1,)), ((), ())),
        preferred_element_type=jnp.float32,
    ) + b1_ref[...]
    h1 = jnp.tanh(z1.astype(dtype))        # tanh in storage dtype (bf16 on v6e/v7x)

    # Layer 2: (h, h) @ (h, TILE_B) -> (h, TILE_B)
    z2 = jnp.dot(w2_ref[...], h1, preferred_element_type=jnp.float32) + b2_ref[...]
    h2 = jnp.tanh(z2.astype(dtype))

    # Value head: (1, h) @ (h, TILE_B) -> (1, TILE_B): lane-dense unmasked store.
    z3 = jnp.dot(w3_ref[...], h2, preferred_element_type=jnp.float32) + b3_ref[...]
    o_ref[...] = z3.astype(o_ref.dtype)


def value_forward(x, params, *, tile_b=4096, compute_dtype=None):
    """x: (B, obs) -> (B, 1), matching the PyTorch module's forward.

    compute_dtype: pass jnp.bfloat16 on v6e/v7x (halves x HBM traffic, doubles
    bf16 VPU/EUP packing for tanh; dots still accumulate in f32).  Leave None
    (keep input dtype, typically f32) on v5e to avoid extra converts.
    """
    w1, b1, w2, b2, w3, b3 = params        # (out, in) weights, (out, 1) biases
    B, obs = x.shape
    h = w1.shape[0]

    if compute_dtype is not None:
        x = x.astype(compute_dtype)
        w1, b1, w2, b2, w3, b3 = (p.astype(compute_dtype)
                                  for p in (w1, b1, w2, b2, w3, b3))
    dtype = x.dtype
    itemsize = jnp.dtype(dtype).itemsize

    # Batch tile selection (output lane axis => multiples of 128 when tiled):
    #  * B <= 256: one block covering the full arrays (block dims == array dims,
    #    so no (8,128) alignment constraints).  At production B~8 this call is
    #    pure launch overhead -- fuse with adjacent kernels in that regime.
    #  * else: big lane-aligned tiles to amortize the ~0.35us/step pipeline
    #    overhead, capped near B/2 so the grid has >= 2 steps and v7x's two
    #    TensorCores both get work (no-op on single-TC v5e/v6e).
    if B <= 256:
        tile_b = B
    else:
        half_b = _round_up(pl.cdiv(B, 2), 128)
        tile_b = max(128, (min(tile_b, half_b) // 128) * 128)
    grid = (pl.cdiv(B, tile_b),)
    # If B % tile_b != 0 the last block is partial: the padded rows are junk,
    # but each output column depends only on its own input column and writeback
    # is clipped, so valid lanes are unaffected.

    # VMEM budget: double-buffered x/out tiles (x is lane-padded obs->128 in
    # VMEM), resident params, f32 activations; 2x margin + slack; capped with
    # headroom below the physical ceiling (64 MiB v7x, 128 MiB v5e/v6e).
    p_bytes = sum(int(p.size) * jnp.dtype(p.dtype).itemsize
                  for p in (w1, b1, w2, b2, w3, b3))
    x_tile_bytes = tile_b * _round_up(obs, 128) * itemsize
    out_tile_bytes = 8 * tile_b * itemsize
    act_bytes = (_round_up(obs, 8) + 4 * _round_up(h, 8) + 8) * tile_b * 4
    vmem_limit = 2 * (2 * (x_tile_bytes + out_tile_bytes) + p_bytes + act_bytes) + (4 << 20)
    try:
        vmem_cap = max(pltpu.get_tpu_info().vmem_capacity_bytes - (16 << 20), 32 << 20)
    except Exception:
        vmem_cap = 48 << 20                 # safe for all generations incl. v7x
    vmem_limit = int(min(max(vmem_limit, 16 << 20), vmem_cap))

    cost = pl.CostEstimate(
        flops=2 * B * (obs * h + h * h + h),
        transcendentals=2 * B * h,
        bytes_accessed=(B * obs + B) * itemsize + p_bytes,   # single pass over x
    )

    def weight_spec(shape):
        return pl.BlockSpec(shape, lambda i: (0, 0))   # VMEM-resident across grid

    out_1b = pl.pallas_call(
        value_mlp_kernel,
        out_shape=jax.ShapeDtypeStruct((1, B), dtype),
        grid=grid,
        in_specs=[
            pl.BlockSpec((tile_b, obs), lambda i: (i, 0)),   # native x layout
            weight_spec((h, obs)),
            weight_spec((h, 1)),
            weight_spec((h, h)),
            weight_spec((h, 1)),
            weight_spec((1, h)),
            weight_spec((1, 1)),
        ],
        out_specs=pl.BlockSpec((1, tile_b), lambda i: (0, i)),
        compiler_params=pltpu.CompilerParams(
            dimension_semantics=("parallel",),
            vmem_limit_bytes=vmem_limit,
        ),
        cost_estimate=cost,
    )(x, w1, b1, w2, b2, w3, b3)

    # (1, B) -> (B, 1): both layouts are the same B contiguous elements.
    return out_1b.reshape(B, 1)


def init_value_params(key, observ_shape, h_size, dtype=jnp.float32):
    """nn.Linear default init U(-1/sqrt(fan_in), +1/sqrt(fan_in)); weights kept
    in PyTorch (out, in) layout, biases as (out, 1) columns for lane broadcast.
    value_head.weight *= 0.1 and value_head.bias *= 0.0 as in the module."""
    k1, k2, k3, k4, k5, k6 = jax.random.split(key, 6)

    def linear(kw, kb, fan_in, fan_out):
        bound = 1.0 / (fan_in ** 0.5)
        w = jax.random.uniform(kw, (fan_out, fan_in), jnp.float32, -bound, bound)
        b = jax.random.uniform(kb, (fan_out, 1), jnp.float32, -bound, bound)
        return w.astype(dtype), b.astype(dtype)

    w1, b1 = linear(k1, k2, observ_shape, h_size)
    w2, b2 = linear(k3, k4, h_size, h_size)
    w3, b3 = linear(k5, k6, h_size, 1)
    w3 = w3 * 0.1          # value_head.weight.data.mul_(0.1)
    b3 = b3 * 0.0          # value_head.bias.data.mul_(0.0)
    return (w1, b1, w2, b2, w3, b3)


def value_forward_ref(x, params):
    """Pure-JAX reference with nn.Linear semantics (y = x @ W.T + b)."""
    w1, b1, w2, b2, w3, b3 = params
    h1 = jnp.tanh(x @ w1.T + b1.T)
    h2 = jnp.tanh(h1 @ w2.T + b2.T)
    return h2 @ w3.T + b3.T


if __name__ == "__main__":
    observ_shape = 16
    h_size = 32
    batch = 8

    key = jax.random.PRNGKey(0)
    kx, kp = jax.random.split(key)
    x = jax.random.normal(kx, (batch, observ_shape), jnp.float32)
    params = init_value_params(kp, observ_shape, h_size)

    # 1) Small-batch f32 path (production-like shapes), tight check.
    out = jax.block_until_ready(value_forward(x, params))
    ref = value_forward_ref(x, params)
    assert out.shape == (batch, 1)
    assert jnp.allclose(out, ref, atol=1e-5, rtol=1e-5)

    # 2) Multi-step grid path (partial last block), f32, tight check.
    x_big = jax.random.normal(kx, (300, observ_shape), jnp.float32)
    out_big = jax.block_until_ready(value_forward(x_big, params))
    ref_big = value_forward_ref(x_big, params)
    assert out_big.shape == (300, 1)
    assert jnp.allclose(out_big, ref_big, atol=1e-5, rtol=1e-5)

    # 3) bf16 compute path (recommended for v6e/v7x); loose tolerance vs f32 ref.
    out_bf16 = jax.block_until_ready(
        value_forward(x, params, compute_dtype=jnp.bfloat16))
    assert out_bf16.shape == (batch, 1)
    assert jnp.allclose(out_bf16.astype(jnp.float32), ref, atol=5e-2, rtol=5e-2)

    print("KERNEL_OK")
</pallas_src>

<mosaic_0001>
module attributes {stable_mosaic.version = 11 : i64} {
  func.func @value_mlp_kernel(%arg0: i32, %arg1: memref<8x16xf32, #tpu.memory_space<vmem>>, %arg2: memref<32x16xf32, #tpu.memory_space<vmem>>, %arg3: memref<32x1xf32, #tpu.memory_space<vmem>>, %arg4: memref<32x32xf32, #tpu.memory_space<vmem>>, %arg5: memref<32x1xf32, #tpu.memory_space<vmem>>, %arg6: memref<1x32xf32, #tpu.memory_space<vmem>>, %arg7: memref<1x1xf32, #tpu.memory_space<vmem>>, %arg8: memref<1x8xf32, #tpu.memory_space<vmem>>) attributes {dimension_semantics = [#tpu.dimension_semantics<parallel>], iteration_bounds = array<i64: 1>, scalar_prefetch = 0 : i64, scratch_operands = 0 : i64, tpu.core_type = #tpu.core_type<tc>, window_params = [{transform_indices = @transform_0, window_bounds = array<i64: 8, 16>}, {pipeline_mode = #tpu.pipeline_mode<synchronous>, transform_indices = @transform_1, window_bounds = array<i64: 32, 16>}, {pipeline_mode = #tpu.pipeline_mode<synchronous>, transform_indices = @transform_2, window_bounds = array<i64: 32, 1>}, {pipeline_mode = #tpu.pipeline_mode<synchronous>, transform_indices = @transform_3, window_bounds = array<i64: 32, 32>}, {pipeline_mode = #tpu.pipeline_mode<synchronous>, transform_indices = @transform_4, window_bounds = array<i64: 32, 1>}, {pipeline_mode = #tpu.pipeline_mode<synchronous>, transform_indices = @transform_5, window_bounds = array<i64: 1, 32>}, {pipeline_mode = #tpu.pipeline_mode<synchronous>, transform_indices = @transform_6, window_bounds = array<i64: 1, 1>}, {transform_indices = @transform_7, window_bounds = array<i64: 1, 8>}]} {
    %c0 = arith.constant 0 : index
    %c0_0 = arith.constant 0 : index
    %0 = vector.load %arg1[%c0, %c0_0] : memref<8x16xf32, #tpu.memory_space<vmem>>, vector<8x16xf32>
    %c0_1 = arith.constant 0 : index
    %c0_2 = arith.constant 0 : index
    %1 = vector.load %arg2[%c0_1, %c0_2] : memref<32x16xf32, #tpu.memory_space<vmem>>, vector<32x16xf32>
    %cst = arith.constant dense<0.000000e+00> : vector<32x8xf32>
    %2 = tpu.matmul %1, %0, %cst {dimension_numbers = #tpu.dot_dimension_numbers<[1], [1], [0], [0], [0, 0, 1, 0], [], []>} : vector<32x16xf32>, vector<8x16xf32>, vector<32x8xf32> -> vector<32x8xf32>
    %c0_3 = arith.constant 0 : index
    %c0_4 = arith.constant 0 : index
    %3 = vector.load %arg3[%c0_3, %c0_4] : memref<32x1xf32, #tpu.memory_space<vmem>>, vector<32x1xf32>
    %4 = vector.broadcast %3 : vector<32x1xf32> to vector<32x8xf32>
    %5 = arith.addf %2, %4 : vector<32x8xf32>
    %6 = math.tanh %5 : vector<32x8xf32>
    %c0_5 = arith.constant 0 : index
    %c0_6 = arith.constant 0 : index
    %7 = vector.load %arg4[%c0_5, %c0_6] : memref<32x32xf32, #tpu.memory_space<vmem>>, vector<32x32xf32>
    %cst_7 = arith.constant dense<0.000000e+00> : vector<32x8xf32>
    %8 = tpu.matmul %7, %6, %cst_7 {dimension_numbers = #tpu.dot_dimension_numbers<[1], [0], [0], [1], [0, 0, 1, 1], [], []>} : vector<32x32xf32>, vector<32x8xf32>, vector<32x8xf32> -> vector<32x8xf32>
    %c0_8 = arith.constant 0 : index
    %c0_9 = arith.constant 0 : index
    %9 = vector.load %arg5[%c0_8, %c0_9] : memref<32x1xf32, #tpu.memory_space<vmem>>, vector<32x1xf32>
    %10 = vector.broadcast %9 : vector<32x1xf32> to vector<32x8xf32>
    %11 = arith.addf %8, %10 : vector<32x8xf32>
    %12 = math.tanh %11 : vector<32x8xf32>
    %c0_10 = arith.constant 0 : index
    %c0_11 = arith.constant 0 : index
    %13 = vector.load %arg6[%c0_10, %c0_11] : memref<1x32xf32, #tpu.memory_space<vmem>>, vector<1x32xf32>
    %cst_12 = arith.constant dense<0.000000e+00> : vector<1x8xf32>
    %14 = tpu.matmul %13, %12, %cst_12 {dimension_numbers = #tpu.dot_dimension_numbers<[1], [0], [0], [1], [0, 0, 1, 1], [], []>} : vector<1x32xf32>, vector<32x8xf32>, vector<1x8xf32> -> vector<1x8xf32>
    %c0_13 = arith.constant 0 : index
    %c0_14 = arith.constant 0 : index
    %15 = vector.load %arg7[%c0_13, %c0_14] : memref<1x1xf32, #tpu.memory_space<vmem>>, vector<1x1xf32>
    %16 = vector.broadcast %15 : vector<1x1xf32> to vector<1x8xf32>
    %17 = arith.addf %14, %16 : vector<1x8xf32>
    %c0_15 = arith.constant 0 : index
    %c0_16 = arith.constant 0 : index
    %18 = vector.load %arg8[%c0_15, %c0_16] : memref<1x8xf32, #tpu.memory_space<vmem>>, vector<1x8xf32>
    tpu.vector_store %arg8[%c0_15, %c0_16], %17 {strides = array<i32>} : memref<1x8xf32, #tpu.memory_space<vmem>>, vector<1x8xf32>,
    return
  }
  func.func @transform_0(%arg0: i32) -> (i32, i32) {
    %c0_i32 = arith.constant 0 : i32
    %c0_i32_0 = arith.constant 0 : i32
    return %arg0, %c0_i32 : i32, i32
  }
  func.func @transform_1(%arg0: i32) -> (i32, i32) {
    %c0_i32 = arith.constant 0 : i32
    %c0_i32_0 = arith.constant 0 : i32
    %c0_i32_1 = arith.constant 0 : i32
    return %c0_i32, %c0_i32_0 : i32, i32
  }
  func.func @transform_2(%arg0: i32) -> (i32, i32) {
    %c0_i32 = arith.constant 0 : i32
    %c0_i32_0 = arith.constant 0 : i32
    %c0_i32_1 = arith.constant 0 : i32
    return %c0_i32, %c0_i32_0 : i32, i32
  }
  func.func @transform_3(%arg0: i32) -> (i32, i32) {
    %c0_i32 = arith.constant 0 : i32
    %c0_i32_0 = arith.constant 0 : i32
    %c0_i32_1 = arith.constant 0 : i32
    return %c0_i32, %c0_i32_0 : i32, i32
  }
  func.func @transform_4(%arg0: i32) -> (i32, i32) {
    %c0_i32 = arith.constant 0 : i32
    %c0_i32_0 = arith.constant 0 : i32
    %c0_i32_1 = arith.constant 0 : i32
    return %c0_i32, %c0_i32_0 : i32, i32
  }
  func.func @transform_5(%arg0: i32) -> (i32, i32) {
    %c0_i32 = arith.constant 0 : i32
    %c0_i32_0 = arith.constant 0 : i32
    %c0_i32_1 = arith.constant 0 : i32
    return %c0_i32, %c0_i32_0 : i32, i32
  }
  func.func @transform_6(%arg0: i32) -> (i32, i32) {
    %c0_i32 = arith.constant 0 : i32
    %c0_i32_0 = arith.constant 0 : i32
    %c0_i32_1 = arith.constant 0 : i32
    return %c0_i32, %c0_i32_0 : i32, i32
  }
  func.func @transform_7(%arg0: i32) -> (i32, i32) {
    %c0_i32 = arith.constant 0 : i32
    %c0_i32_0 = arith.constant 0 : i32
    return %c0_i32, %arg0 : i32, i32
  }
}

</mosaic_0001>

<bundles_post_ra>
// kernel: tpu_custom_call.1
= control target key start
LH: loop header
LB: loop body
LE: loop exit
PB: predicated region body
PF: predicated region fallthrough
CT: control target
= control target key end

     0   :  { %s613_s0 = inlined_call_operand.vmem [shape: f32[8,16], index: 0, kind: input, shape index: {}]   ;;  %s614_s1 = inlined_call_operand.vmem [shape: f32[32,16], index: 1, kind: input, shape index: {}]   ;;  %s615_s2 = inlined_call_operand.vmem [shape: f32[32,1], index: 2, kind: input, shape index: {}]   ;;  %s616_s3 = inlined_call_operand.vmem [shape: f32[32,32], index: 3, kind: input, shape index: {}]   ;;  %s617_s4 = inlined_call_operand.vmem [shape: f32[32,1], index: 4, kind: input, shape index: {}]   ;;  %s618_s5 = inlined_call_operand.vmem [shape: f32[1,32], index: 5, kind: input, shape index: {}]   ;;  %s619_s6 = inlined_call_operand.<no memory space> [shape: f32[1,1], index: 6, kind: input, shape index: {}]   ;;  %s620_s7 = inlined_call_operand.hbm [shape: f32[1,8], index: 7, kind: output, shape index: {}]  }
   0x1   :  { %v12_v0 = vstv %s619_s6 }
   0x2   :  { %13 = vst [vmem:[#allocation2] sm:$0x1] %v12_v0 }
   0x3   :  { %v29_v1 = vld [vmem:[%s613_s0] sm:$0xff]  ;;  %vm58_vm0 = vcmask 130048   ;;  %v37_v3 = vld [vmem:[%s615_s2 + $0x18] sm:$0xff]  ;;  %v31_v4 = vld [vmem:[%s614_s1 + $0x8] sm:$0xff]  ;;  %v498_v5 = vmov 0  }
   0x4   :  { %v30_v2 = vld [vmem:[%s614_s1] sm:$0xff]  ;;  %421 = vmatprep.subr.msk.mxu0 %vm58_vm0, %v29_v1  ;;  %458 = vset.pattern.permute.xlu0 %v498_v5  ;;  %v35_v6 = vld [vmem:[%s615_s2 + $0x8] sm:$0xff]  ;;  %v32_v7 = vld [vmem:[%s614_s1 + $0x10] sm:$0xff] }
   0x5   :  { %423 = vmatprep.mubr.msk.f32.mxu0 %vm58_vm0, %v30_v2  ;;  %422 = vmatpush3.xpose.msk.msra.mxu0 %vm58_vm0, %v29_v1  ;;  %v36_v8 = vld [vmem:[%s615_s2 + $0x10] sm:$0xff] }
   0x6   :  { %55 = vperm.xlu0 %458, %v37_v3   ;;  %459 = vset.pattern.permute.xlu1 %v498_v5 }
   0x7   :  { %45 = vperm.xlu1 %459, %v35_v6  }
   0x8   :  { %14 = vsyncpa [#allocation4], 0  ;;  %424 = vmatmul.mubr.msk.f32.vlgmr.msra.gmra.mxu0 %vm58_vm0, %v31_v4  ;;  %v34_v9 = vld [vmem:[%s615_s2] sm:$0xff]  ;;  %v33_v10 = vld [vmem:[%s614_s1 + $0x18] sm:$0xff]  ;;  %vm191_vm1 = vcmask 261120   ;;  %v499_v36 = vmov 0.0   ;;  %v300_v54 = vlaneseq }
   0x9   :  { %426 = vmatprep.mubr.msk.f32.mxu0 %vm58_vm0, %v32_v7  ;;  %v170_v11 = vld [vmem:[%s617_s4 + $0x18] sm:$0xff]  ;;  %v169_v12 = vld [vmem:[%s617_s4 + $0x10] sm:$0xff]  ;;  %v168_v13 = vld [vmem:[%s617_s4 + $0x8] sm:$0xff]  ;;  %443 = vmatprep.subr.mxu0 %v499_v36  ;;  %vm500_vm2 = vmmov 0   ;;  %s501_s9 = smov [#allocation3]   ;;  %vm377_vm3 = vcmask 57344  }
   0xa   :  { %50 = vperm.xlu0 %458, %v36_v8   ;;  %v167_v14 = vld [vmem:[%s617_s4] sm:$0xff]  ;;  %v164_v33 = vld [vmem:[%s616_s3 + $0x8] sm:$0xff]  ;;  %v165_v34 = vld [vmem:[%s616_s3 + $0x10] sm:$0xff]  ;;  %v301_v55 = vshrl.u32 %v300_v54, 7  ;;  %s385_s0 = sshll.u32 %s501_s9, 4  ;;  %s386_s0 = int_to_ptr.vmem [resolvable:$true] %s385_s0 }
   0xb   :  { %40 = vperm.xlu1 %459, %v34_v9   ;;  %v294_v15 = vld [vmem:[#allocation2] sm:$0x1]  ;;  %v166_v35 = vld [vmem:[%s616_s3 + $0x18] sm:$0xff]  ;;  %s476_s10 = scalar_lea.vmem %s386_s0, 16  ;;  %p481_p1 = scmp.lt.s32.totalorder %s386_s0, %s386_s0 }
   0xc   :  { %427 = vmatmul.mubr.msk.f32.gmra.mxu0 %vm58_vm0, %v33_v10  ;;  %v163_v16 = vld [vmem:[%s616_s3] sm:$0xff]  ;;  %v302_v56 = vsub.s32 0, %v301_v55  ;;  %p477_p0 = scmp.ne.s32.totalorder %s386_s0, %s476_s10 }
   0xd   :  { %437 = vmatprep.mubr.msk.f32.mxu1 %vm191_vm1, %v163_v16  ;;  %451 = vmatprep.mubr.msk.f32.mxu0 %vm500_vm2, %v499_v36  ;;  %v293_v52 = vld [vmem:[%s618_s5] sm:$0x1]  ;;  %s480_s5 = scalar_lea.vmem %s386_s0, 32 }
   0xe   :  { %188 = vperm.xlu0 %458, %v170_v11   ;;  %p482_p2 = scmp.lt.s32.totalorder %s480_s5, %s476_s10 }
   0xf   :  { %183 = vperm.xlu1 %459, %v169_v12  }
  0x10   :  { %p483_p3 = por %p482_p2, %p481_p1 }
  0x12   :  { %178 = vperm.xlu0 %458, %v168_v13   ;;  %p484_p4 = pnand %p483_p3, %p477_p0 }
  0x13   :  { %173 = vperm.xlu1 %459, %v167_v14  }
  0x16   :  { %297 = vperm.xlu0 %458, %v294_v15  }
  0x81   :  { %v56_v17 = vpop.permute.xlu0 %55 }
  0x82   :  { %v46_v19 = vpop.permute.xlu1 %45 }
  0x85   :  { %v51_v23 = vpop.permute.xlu0 %50 }
  0x86   :  { %v41_v27 = vpop.permute.xlu1 %40 }
  0x89   :  { %v189_v37 = vpop.permute.xlu0 %188 }
  0x8a   :  { %v184_v39 = vpop.permute.xlu1 %183 }
  0x8d   :  { %v179_v43 = vpop.permute.xlu0 %178 }
  0x8e   :  { %v174_v47 = vpop.permute.xlu1 %173 }
  0x91   :  { %v298_v57 = vpop.permute.xlu0 %297 }
  0x92   :  { %v303_v58 = vrot.slane %v298_v57, %v302_v56 }
  0xc8   :  { %v425_v18 = vpop.f32.mrf.mxu0 }
  0xc9   :  { %v146_v25 = vadd.f32 %v425_v18, %v46_v19 }
  0xca   :  { %v140_v20 = vpop.f32.mrf.mxu0 }
  0xcb   :  { %v141_v28 = vadd.f32 %v140_v20, %v41_v27 }
  0xcc   :  { %v428_v21 = vpop.f32.mrf.mxu0 }
  0xcd   :  { %v156_v22 = vadd.f32 %v428_v21, %v56_v17 }
  0xce   :  { %v150_v24 = vpop.f32.mrf.mxu0 }
  0xcf   :  { %460 = vtanh.f32 %v156_v22  ;;  %v151_v26 = vadd.f32 %v150_v24, %v51_v23 }
  0xd1   :  { %462 = vtanh.f32 %v151_v26 }
  0xd2   :  { %464 = vtanh.f32 %v146_v25 }
  0xd3   :  { %466 = vtanh.f32 %v141_v28 }
  0xdc   :  { %v461_v29 = vpop.eup %460 }
  0xdd   :  { %429 = vmatprep.subr.mxu1 %v461_v29 }
  0xde   :  { %v463_v30 = vpop.eup %462  ;;  %430 = vmatpush3.msra.mxu1 %v461_v29 }
  0xdf   :  { %431 = vmatprep.subr.mxu1 %v463_v30  ;;  %v465_v31 = vpop.eup %464 }
  0xe0   :  { %432 = vmatpush3.msra.mxu1 %v463_v30  ;;  %v467_v32 = vpop.eup %466 }
  0xe1   :  { %433 = vmatprep.subr.mxu1 %v465_v31 }
  0xe2   :  { %434 = vmatpush3.msra.mxu1 %v465_v31 }
  0xe3   :  { %435 = vmatprep.subr.mxu1 %v467_v32 }
  0xe4   :  { %436 = vmatpush3.msra.mxu1 %v467_v32 }
  0xe5   :  { %438 = vmatmul.mubr.msk.f32.vlgmr.msra.gmra.mxu1 %vm191_vm1, %v164_v33 }
  0xe6   :  { %440 = vmatprep.mubr.msk.f32.mxu1 %vm191_vm1, %v165_v34 }
  0xe9   :  { %441 = vmatmul.mubr.msk.f32.gmra.mxu1 %vm191_vm1, %v166_v35 }
 0x1a5   :  { %v439_v38 = vpop.f32.mrf.mxu1 }
 0x1a6   :  { %v276_v45 = vadd.f32 %v439_v38, %v179_v43 }
 0x1a7   :  { %v270_v40 = vpop.f32.mrf.mxu1 }
 0x1a8   :  { %v271_v48 = vadd.f32 %v270_v40, %v174_v47 }
 0x1a9   :  { %v442_v41 = vpop.f32.mrf.mxu1 }
 0x1aa   :  { %v286_v42 = vadd.f32 %v442_v41, %v189_v37 }
 0x1ab   :  { %v280_v44 = vpop.f32.mrf.mxu1 }
 0x1ac   :  { %468 = vtanh.f32 %v286_v42  ;;  %v281_v46 = vadd.f32 %v280_v44, %v184_v39 }
 0x1ae   :  { %470 = vtanh.f32 %v281_v46 }
 0x1af   :  { %472 = vtanh.f32 %v276_v45 }
 0x1b0   :  { %474 = vtanh.f32 %v271_v48 }
 0x1b9   :  { %v469_v49 = vpop.eup %468 }
 0x1ba   :  { %444 = vmatpush3.msra.mxu0 %v469_v49 }
 0x1bb   :  { %v471_v50 = vpop.eup %470  ;;  %445 = vmatprep.subr.mxu0 %v499_v36 }
 0x1bc   :  { %446 = vmatpush3.msra.mxu0 %v471_v50  ;;  %v473_v51 = vpop.eup %472 }
 0x1bd   :  { %447 = vmatprep.subr.mxu0 %v499_v36  ;;  %v475_v53 = vpop.eup %474 }
 0x1be   :  { %448 = vmatpush3.msra.mxu0 %v473_v51 }
 0x1bf   :  { %449 = vmatprep.subr.mxu0 %v499_v36 }
 0x1c0   :  { %450 = vmatpush3.msra.mxu0 %v475_v53 }
 0x1c1   :  { %452 = vmatmul.mubr.msk.f32.vlgmr.msra.gmra.mxu0 %vm191_vm1, %v293_v52 }
 0x281   :  { %v373_v59 = vpop.f32.mrf.mxu0 }
 0x282   :  { %v374_v60 = vadd.f32 %v373_v59, %v303_v58 }
 0x283   :  { %v453_v61 = vpop.f32.mrf.mxu0 }
 0x284   :  { %378 = vst.msk [vmem:[#allocation3] sm:$0x1] %vm377_vm3, %v374_v60 }
 0x285   :  { %487 = shalt.err (!%p484_p4)
}
 0x286   :  { %388 = dma.vmem_to_hbm [thread:$0]  %s386_s0, 16, %s620_s7, [#allocation4]  }
 0x287   :  { %496 = dma.done.wait [#allocation4], 16  }
 0x288   :  { %497 = vsyncadd [#allocation4], 4294967280 }
 0x289   :  { %392 = vsyncpa [#allocation4], 1 }

</bundles_post_ra>
